<compile_context>
chip_gen: v6e
topology: v6e:2x2x1
jax: 0.10.0
libtpu: 0.0.40
codegen_flags: <defaults>
</compile_context>

<pallas_src>
import functools

import jax
import jax.numpy as jnp
from jax.experimental import pallas as pl
from jax.experimental.pallas import tpu as pltpu

_SELU_LAMBDA = 1.0507009873554805  # torch's fixed SELU scale constant


def _selu_kernel(coef_ref, x_ref, o_ref):
    # coef_ref (SMEM, f32[2]) = [scale*lambda, scale*lambda*alpha], pre-folded
    # in the wrapper -> a single mul per branch on the VPU.
    c_pos = coef_ref[0]
    c_neg = coef_ref[1]
    x = x_ref[...].astype(jnp.float32)  # no-op for f32 inputs
    # exp rides the (otherwise idle) EUP slot.  Clamp the argument so the
    # discarded positive branch never produces inf.
    # TODO(synk): use jnp.expm1 if/when it lowers on all Mosaic versions (better
    # small-|x| accuracy on the negative branch).
    em1 = jnp.exp(jnp.minimum(x, 0.0)) - 1.0
    y = jnp.where(x > 0.0, c_pos * x, c_neg * em1) + 5.0
    o_ref[...] = y.astype(o_ref.dtype)


def _default_block_rows(lanes, itemsize):
    """Per-step block target: ~2 MiB on v5e (16 MiB scoped VMEM default),
    ~4 MiB on v6e/v7x (32 MiB scoped default, 64 MiB physical on v7x)."""
    try:
        kind = jax.devices()[0].device_kind.lower()
    except Exception:
        kind = ""
    if "v5 lite" in kind or "v5e" in kind or "v5lite" in kind:
        target_bytes = 2 << 20
    else:
        target_bytes = 4 << 20
    rows = target_bytes // (lanes * itemsize)
    return max(8, (rows // 8) * 8)


@functools.partial(jax.jit, static_argnames=("block_rows", "lanes"))
def selu_learnable_forward(x, alpha, scale, *, block_rows=None, lanes=None):
    """scale * SELU(x; alpha) + 5.0, element-wise, for any input shape."""
    orig_shape = x.shape
    n = x.size
    if n == 0:
        return x

    itemsize = jnp.dtype(x.dtype).itemsize

    # Lane width: keep the output lane-dense (multiple of 128).  Prefer 512,
    # but drop to 256/128 when that avoids padding the flat array at all.
    if lanes is None:
        lanes = 512
        if n % lanes:
            for cand in (256, 128):
                if n % cand == 0:
                    lanes = cand
                    break

    if block_rows is None:
        block_rows = _default_block_rows(lanes, itemsize)
    block_rows = max(8, (block_rows // 8) * 8)

    # Pad only to the lane granule (usually a no-op); the tail of the grid is
    # handled as a partial block, so there is no pad-to-block-multiple or
    # trailing-slice HBM round trip for well-shaped inputs.
    flat = x.reshape(-1)
    padded_n = pl.cdiv(n, lanes) * lanes
    if padded_n != n:
        flat = jnp.pad(flat, (0, padded_n - n))
    rows = padded_n // lanes
    x2d = flat.reshape(rows, lanes)

    # Shrink the row block for small inputs but keep >= 4 grid steps when
    # possible: both v7x TensorCores get work and the double-buffer pipeline
    # stays full.  Block rows stay a multiple of the 8-sublane granule.
    block_rows = min(block_rows, max(8, (rows // 4 // 8) * 8))
    grid = (pl.cdiv(rows, block_rows),)

    # Fold the scalar constants once (outside the kernel's vector path).
    s = jnp.asarray(scale, jnp.float32)
    a = jnp.asarray(alpha, jnp.float32)
    c_pos = s * jnp.float32(_SELU_LAMBDA)
    coeffs = jnp.stack([c_pos, c_pos * a])

    # 2 input + 2 output double-buffers of `block_bytes` each, plus headroom;
    # capped under v7x's 64 MiB physical VMEM.
    block_bytes = block_rows * lanes * itemsize
    vmem_limit = int(min(max(6 * block_bytes, 16 << 20), 48 << 20))

    out2d = pl.pallas_call(
        _selu_kernel,
        out_shape=jax.ShapeDtypeStruct((rows, lanes), x.dtype),
        grid=grid,
        in_specs=[
            pl.BlockSpec(memory_space=pltpu.MemorySpace.SMEM),     # coeffs
            pl.BlockSpec((block_rows, lanes), lambda i: (i, 0)),   # x tile
        ],
        out_specs=pl.BlockSpec((block_rows, lanes), lambda i: (i, 0)),
        compiler_params=pltpu.CompilerParams(
            dimension_semantics=("parallel",),
            vmem_limit_bytes=vmem_limit,
        ),
        cost_estimate=pl.CostEstimate(
            flops=6 * padded_n,
            transcendentals=padded_n,
            bytes_accessed=2 * padded_n * itemsize,
        ),
    )(coeffs, x2d)

    if padded_n != n:
        return out2d.reshape(-1)[:n].reshape(orig_shape)
    return out2d.reshape(orig_shape)


def reference_forward(x, alpha, scale):
    """Pure-JAX reference of the same (intended) semantics."""
    x32 = x.astype(jnp.float32)
    neg = alpha * (jnp.exp(jnp.minimum(x32, 0.0)) - 1.0)
    selu = _SELU_LAMBDA * jnp.where(x32 > 0.0, x32, neg)
    return (scale * selu + 5.0).astype(x.dtype)


if __name__ == "__main__":
    key = jax.random.PRNGKey(0)
    alpha = jnp.float32(1.0)   # nn.Parameter(torch.tensor(1.0))
    scale = jnp.float32(1.0)   # nn.Parameter(torch.tensor(1.0))

    shapes = [
        (2, 4, 16, 16),  # module-sized example (no padding path)
        (8, 1024),       # multi-step grid
        (3, 5, 7),       # ragged size: exercises lane-granule pad + partial block
    ]
    keys = jax.random.split(key, len(shapes))
    for k, shp in zip(keys, shapes):
        x = jax.random.normal(k, shp, dtype=jnp.float32)
        out = jax.block_until_ready(selu_learnable_forward(x, alpha, scale))
        ref = reference_forward(x, alpha, scale)
        assert out.shape == x.shape, f"shape mismatch for {shp}"
        assert jnp.allclose(out, ref, atol=1e-5, rtol=1e-5), f"mismatch for {shp}"

    print("KERNEL_OK")
</pallas_src>

<mosaic_0001>
module attributes {stable_mosaic.version = 11 : i64} {
  func.func @_selu_kernel(%arg0: i32, %arg1: memref<2xf32, #tpu.memory_space<smem>>, %arg2: memref<8x512xf32, #tpu.memory_space<vmem>>, %arg3: memref<8x512xf32, #tpu.memory_space<vmem>>) attributes {dimension_semantics = [#tpu.dimension_semantics<parallel>], iteration_bounds = array<i64: 1>, scalar_prefetch = 0 : i64, scratch_operands = 0 : i64, tpu.core_type = #tpu.core_type<tc>, window_params = [{transform_indices = @transform_0, window_bounds = array<i64: 2>}, {transform_indices = @transform_1, window_bounds = array<i64: 8, 512>}, {transform_indices = @transform_2, window_bounds = array<i64: 8, 512>}]} {
    %c0 = arith.constant 0 : index
    %0 = memref.load %arg1[%c0] : memref<2xf32, #tpu.memory_space<smem>>
    %c1 = arith.constant 1 : index
    %1 = memref.load %arg1[%c1] : memref<2xf32, #tpu.memory_space<smem>>
    %c0_0 = arith.constant 0 : index
    %c0_1 = arith.constant 0 : index
    %2 = vector.load %arg2[%c0_0, %c0_1] : memref<8x512xf32, #tpu.memory_space<vmem>>, vector<8x512xf32>
    %cst = arith.constant 0.000000e+00 : f32
    %3 = vector.broadcast %cst : f32 to vector<8x512xf32>
    %4 = arith.minimumf %2, %3 : vector<8x512xf32>
    %5 = math.exp %4 : vector<8x512xf32>
    %cst_2 = arith.constant 1.000000e+00 : f32
    %6 = vector.broadcast %cst_2 : f32 to vector<8x512xf32>
    %7 = arith.subf %5, %6 : vector<8x512xf32>
    %cst_3 = arith.constant 0.000000e+00 : f32
    %8 = vector.broadcast %cst_3 : f32 to vector<8x512xf32>
    %9 = arith.cmpf ogt, %2, %8 : vector<8x512xf32>
    %10 = vector.broadcast %0 : f32 to vector<8x512xf32>
    %11 = arith.mulf %10, %2 : vector<8x512xf32>
    %12 = vector.broadcast %1 : f32 to vector<8x512xf32>
    %13 = arith.mulf %12, %7 : vector<8x512xf32>
    %14 = arith.select %9, %11, %13 : vector<8x512xi1>, vector<8x512xf32>
    %cst_4 = arith.constant 5.000000e+00 : f32
    %15 = vector.broadcast %cst_4 : f32 to vector<8x512xf32>
    %16 = arith.addf %14, %15 : vector<8x512xf32>
    %c0_5 = arith.constant 0 : index
    %c0_6 = arith.constant 0 : index
    %17 = vector.load %arg3[%c0_5, %c0_6] : memref<8x512xf32, #tpu.memory_space<vmem>>, vector<8x512xf32>
    tpu.vector_store %arg3[%c0_5, %c0_6], %16 {strides = array<i32>} : memref<8x512xf32, #tpu.memory_space<vmem>>, vector<8x512xf32>,
    return
  }
  func.func @transform_0(%arg0: i32) -> i32 {
    %c0_i32 = arith.constant 0 : i32
    %c0_i32_0 = arith.constant 0 : i32
    return %c0_i32 : i32
  }
  func.func @transform_1(%arg0: i32) -> (i32, i32) {
    %c0_i32 = arith.constant 0 : i32
    %c0_i32_0 = arith.constant 0 : i32
    return %arg0, %c0_i32 : i32, i32
  }
  func.func @transform_2(%arg0: i32) -> (i32, i32) {
    %c0_i32 = arith.constant 0 : i32
    %c0_i32_0 = arith.constant 0 : i32
    return %arg0, %c0_i32 : i32, i32
  }
}

</mosaic_0001>

<bundles_post_ra>
// kernel: selu_learnable_forward.1
= control target key start
LH: loop header
LB: loop body
LE: loop exit
PB: predicated region body
PF: predicated region fallthrough
CT: control target
= control target key end

     0   :  { %7 = vsyncpa [#allocation3], 0  ;;  %s155_s0 = inlined_call_operand.vmem [shape: f32[2], index: 0, kind: input, shape index: {}]   ;;  %s156_s1 = inlined_call_operand.vmem [shape: f32[4,512], index: 1, kind: input, shape index: {}]   ;;  %s157_s2 = inlined_call_operand.vmem [shape: f32[4,512], index: 2, kind: output, shape index: {}]  }
   0x1   :  { %s14_s11 = sshll.u32 %s155_s0, 4  ;;  %s15_s11 = int_to_ptr.vmem [resolvable:$true] %s14_s11 }
   0x2   :  { %s110_s12 = scalar_lea.vmem %s15_s11, 16  ;;  %p115_p1 = scmp.lt.s32.totalorder %s15_s11, %s15_s11 }
   0x3   :  { %p111_p0 = scmp.ne.s32.totalorder %s15_s11, %s110_s12  ;;  %p116_p2 = scmp.lt.s32.totalorder %s110_s12, %s110_s12 }
   0x5   :  { %p117_p3 = por %p116_p2, %p115_p1 }
   0x7   :  { %p118_p4 = pnand %p117_p3, %p111_p0 }
   0x9   :  { %121 = shalt.err (!%p118_p4)
}
   0xa   :  { %s124_s13 = smov [#allocation2]  }
   0xb   :  { %17 = dma.vmem_to_smem %s15_s11, 16, %s124_s13, [#allocation3]  }
   0xc   :  { %122 = dma.done.wait [#allocation3], 16  }
   0xd   :  { %123 = vsyncadd [#allocation3], 4294967280 }
   0xe   :  { %23 = sfence }
   0xf   :  { %v26_v0 = vld [vmem:[%s156_s1] sm:$0xff]  ;;  %v27_v1 = vld [vmem:[%s156_s1 + $0x8] sm:$0xff]  ;;  %s24_s0 = sld [smem:[#allocation2]] }
  0x10   :  { %v30_v2 = vmin.f32 %v26_v0, 0.0  ;;  %v31_v3 = vmin.f32 %v27_v1, 0.0  ;;  %s100_s18 = sld [smem:[#allocation2 + $0x1]]  ;;  %vm46_vm0 = vcmp.gt.f32.partialorder %v26_v0, 0.0  ;;  %vm47_vm1 = vcmp.gt.f32.partialorder %v27_v1, 0.0 }
  0x12   :  { %v34_v4 = vmul.f32 1.442695, %v30_v2  ;;  %v36_v5 = vmul.f32 1.442695, %v31_v3 }
  0x14   :  { %106 = vpow2.f32 %v34_v4 }
  0x15   :  { %108 = vpow2.f32 %v36_v5  ;;  %v50_v6 = vstv %s24_s0 }
  0x16   :  { %v55_v8 = vstv %s100_s18  ;;  %v51_v11 = vmul.f32 %v50_v6, %v26_v0  ;;  %v52_v13 = vmul.f32 %v50_v6, %v27_v1 }
  0x21   :  { %v107_v7 = vpop.eup %106 }
  0x22   :  { %v109_v9 = vpop.eup %108  ;;  %v101_v10 = vadd.f32 -1.0, %v107_v7 }
  0x23   :  { %v102_v12 = vadd.f32 -1.0, %v109_v9 }
  0x24   :  { %v56_v14 = vmul.f32 %v101_v10, %v55_v8 }
  0x25   :  { %v57_v15 = vmul.f32 %v102_v12, %v55_v8 }
  0x26   :  { %v60_v16 = vsel %vm46_vm0, %v51_v11, %v56_v14 }
  0x27   :  { %v64_v17 = vadd.f32 5.0, %v60_v16  ;;  %v61_v18 = vsel %vm47_vm1, %v52_v13, %v57_v15 }
  0x28   :  { %v65_v19 = vadd.f32 5.0, %v61_v18 }
  0x29   :  { %87 = vst [vmem:[%s157_s2] sm:$0xff] %v64_v17 }
  0x2a   :  { %89 = vst [vmem:[%s157_s2 + $0x8] sm:$0xff] %v65_v19 }
  0x2b   :  { %95 = vsyncpa [#allocation3], 1 }

</bundles_post_ra>
